<compile_context>
chip_gen: v7x
topology: tpu7x:2x2x1
jax: 0.10.0
libtpu: 0.0.40
codegen_flags: <defaults>
</compile_context>

<pallas_src>
import numpy as np

import jax
import jax.numpy as jnp
from jax.experimental import pallas as pl
from jax.experimental.pallas import tpu as pltpu

LN_EPS = 1e-5          # nn.LayerNorm default
NEG = -1e30            # finite "-inf" (NaN-safe for fully-masked rows)


# ----------------------------------------------------------------------------
# chip / tiling helpers
# ----------------------------------------------------------------------------
def _chip_defaults():
    """Generation-dependent tile preferences and scoped-VMEM budget."""
    kind = ""
    try:
        kind = jax.devices()[0].device_kind.lower()
    except Exception:
        pass
    vmem_cap = 64 << 20
    try:
        vmem_cap = int(getattr(pltpu.get_tpu_info(), "vmem_capacity_bytes", vmem_cap))
    except Exception:
        pass
    big_vmem = vmem_cap >= (96 << 20)          # v5e / v6e: 128 MiB ; v7x: 64 MiB
    tq_pref = 512 if big_vmem else 256         # larger q tiles -> fewer K/V re-streams
    tk_pref = 128 if "v5" in kind else 256     # v5e MXU is 128-wide; v6e/v7x 256-wide
    vmem_limit = (100 << 20) if big_vmem else (48 << 20)
    return tq_pref, tk_pref, vmem_limit


def _row_tile(n, pref):
    """Largest divisor of n that is a multiple of 8 and <= pref (else n itself)."""
    best = None
    for t in range(8, min(n, pref) + 1, 8):
        if n % t == 0:
            best = t
    return best if best is not None else n


def _lane_tile(n, pref):
    """Largest divisor of n that is a multiple of 128 and <= pref (else n itself)."""
    best = None
    for t in range(128, min(n, pref) + 1, 128):
        if n % t == 0:
            best = t
    return best if best is not None else n


def _resident_spec(shape):
    """Constant-index (VMEM-resident) operand; single-buffered to halve its footprint."""
    idx = lambda *_: (0,) * len(shape)
    if hasattr(pl, "Buffered"):
        try:
            return pl.BlockSpec(shape, idx, pipeline_mode=pl.Buffered(1))
        except TypeError:
            pass
    return pl.BlockSpec(shape, idx)


def _layernorm(v, g, b):
    mu = jnp.mean(v, axis=-1, keepdims=True)
    var = jnp.mean((v - mu) ** 2, axis=-1, keepdims=True)
    return (v - mu) * jax.lax.rsqrt(var + LN_EPS) * g + b


# ----------------------------------------------------------------------------
# Pallas kernels
# ----------------------------------------------------------------------------
def _patch_embed_kernel(p_ref, w_ref, b_ref, pos_ref, out_ref):
    x = jnp.dot(p_ref[...].astype(w_ref.dtype), w_ref[...],
                preferred_element_type=jnp.float32)
    out_ref[...] = (x + b_ref[...] + pos_ref[...]).astype(out_ref.dtype)


def patch_embed(patches, w, b, pos, tq_pref, vmem_limit):
    L, K = patches.shape
    C = w.shape[1]
    tp = _row_tile(L, tq_pref)
    return pl.pallas_call(
        _patch_embed_kernel,
        out_shape=jax.ShapeDtypeStruct((L, C), jnp.bfloat16),
        grid=(L // tp,),
        in_specs=[
            pl.BlockSpec((tp, K), lambda i: (i, 0)),
            _resident_spec((K, C)),
            _resident_spec((1, C)),
            pl.BlockSpec((tp, C), lambda i: (i, 0)),
        ],
        out_specs=pl.BlockSpec((tp, C), lambda i: (i, 0)),
        compiler_params=pltpu.CompilerParams(
            dimension_semantics=("parallel",),
            vmem_limit_bytes=vmem_limit),
    )(patches, w, b, pos)


def _ln_qkv_kernel(x_ref, g_ref, b_ref, wqkv_ref, q_ref, k_ref, v_ref):
    # LN1 in f32, qkv matmul with bf16 operands + f32 accumulation.
    H, _, dh = q_ref.shape
    C = x_ref.shape[1]
    scale = dh ** -0.5
    h = _layernorm(x_ref[...].astype(jnp.float32), g_ref[...], b_ref[...])
    qkv = jnp.dot(h.astype(wqkv_ref.dtype), wqkv_ref[...],
                  preferred_element_type=jnp.float32)           # (tq, 3C)
    # head-major relayout done HERE (once per token per layer, no XLA round-trip);
    # softmax scale folded into q.
    for hd in range(H):
        lo = hd * dh
        q_ref[hd] = (qkv[:, lo:lo + dh] * scale).astype(q_ref.dtype)
        k_ref[hd] = qkv[:, C + lo:C + lo + dh].astype(k_ref.dtype)
        v_ref[hd] = qkv[:, 2 * C + lo:2 * C + lo + dh].astype(v_ref.dtype)


def ln_qkv(x, g, b, wqkv, num_heads, tq, vmem_limit):
    L, C = x.shape
    H = num_heads
    dh = C // H
    out_sds = jax.ShapeDtypeStruct((H, L, dh), jnp.bfloat16)
    return pl.pallas_call(
        _ln_qkv_kernel,
        out_shape=(out_sds, out_sds, out_sds),
        grid=(L // tq,),
        in_specs=[
            pl.BlockSpec((tq, C), lambda i: (i, 0)),
            _resident_spec((1, C)),
            _resident_spec((1, C)),
            _resident_spec((C, 3 * C)),
        ],
        out_specs=(pl.BlockSpec((H, tq, dh), lambda i: (0, i, 0)),
                   pl.BlockSpec((H, tq, dh), lambda i: (0, i, 0)),
                   pl.BlockSpec((H, tq, dh), lambda i: (0, i, 0))),
        compiler_params=pltpu.CompilerParams(
            dimension_semantics=("parallel",),
            vmem_limit_bytes=vmem_limit),
    )(x, g, b, wqkv)


def _attn_mlp_kernel(kvf_ref, kvl_ref,
                     x_ref, segq_ref, segk_ref, q_ref, k_ref, v_ref,
                     wout_ref, bout_ref, ln2g_ref, ln2b_ref,
                     w1_ref, b1_ref, w2_ref, b2_ref,
                     out_ref,
                     m_sc, l_sc, acc_sc):
    i = pl.program_id(0)
    j = pl.program_id(1)

    @pl.when(j == 0)
    def _():
        m_sc[...] = jnp.full(m_sc.shape, NEG, m_sc.dtype)
        l_sc[...] = jnp.zeros(l_sc.shape, l_sc.dtype)
        acc_sc[...] = jnp.zeros(acc_sc.shape, acc_sc.dtype)

    # skip (q_tile, kv_tile) pairs that cannot overlap any image segment
    in_range = jnp.logical_and(j >= kvf_ref[i], j <= kvl_ref[i])

    @pl.when(in_range)
    def _():
        # block-diagonal mask rebuilt in-kernel from segment ids (no (L,L) array)
        mask = segq_ref[...] == segk_ref[...]                    # (tq, tk) bool
        maskf = mask.astype(jnp.float32)

        # batched multi-head scores (scale already folded into q)
        s = jnp.einsum('hqd,hkd->hqk', q_ref[...], k_ref[...],
                       preferred_element_type=jnp.float32)
        s = jnp.where(mask[None, :, :], s, NEG)

        # online softmax (flash) update
        m_prev = m_sc[...]
        m_new = jnp.maximum(m_prev, jnp.max(s, axis=-1, keepdims=True))
        alpha = jnp.exp(m_prev - m_new)
        p = jnp.exp(s - m_new) * maskf[None, :, :]   # multiply = fully-masked-row guard
        l_sc[...] = alpha * l_sc[...] + jnp.sum(p, axis=-1, keepdims=True)
        acc_sc[...] = alpha * acc_sc[...] + jnp.einsum(
            'hqk,hkd->hqd', p.astype(v_ref.dtype), v_ref[...],
            preferred_element_type=jnp.float32)
        m_sc[...] = m_new

    # finalize: merged out-proj + residual + LN2 + MLP(GELU) + residual
    @pl.when(j == pl.num_programs(1) - 1)
    def _():
        H = acc_sc.shape[0]
        inv_l = pl.reciprocal(jnp.maximum(l_sc[...], 1e-30), approx=True)
        o = acc_sc[...] * inv_l                                   # (H, tq, dh) f32
        o2 = jnp.concatenate([o[h] for h in range(H)], axis=-1)   # (tq, C) head-major
        attn = jnp.dot(o2.astype(wout_ref.dtype), wout_ref[...],
                       preferred_element_type=jnp.float32) + bout_ref[...]
        x = x_ref[...].astype(jnp.float32) + attn                 # residual 1
        h2 = _layernorm(x, ln2g_ref[...], ln2b_ref[...])
        ff = jnp.dot(h2.astype(w1_ref.dtype), w1_ref[...],
                     preferred_element_type=jnp.float32) + b1_ref[...]
        ff = jax.nn.gelu(ff, approximate=False)                   # exact (erf) GELU
        ff = jnp.dot(ff.astype(w2_ref.dtype), w2_ref[...],
                     preferred_element_type=jnp.float32) + b2_ref[...]
        out_ref[...] = (x + ff).astype(out_ref.dtype)             # residual 2 (bf16)


def transformer_block(x, seg_col, seg_row, kv_first, kv_last, blk,
                      num_heads, tq, tk, vmem_limit):
    L, C = x.shape
    H = num_heads
    dh = C // H
    M = blk['w1'].shape[1]
    nq, nkv = L // tq, L // tk

    # kernel A: LN1 + qkv projection, written directly in head-major (H, L, dh) layout
    q, k, v = ln_qkv(x, blk['ln1_g'], blk['ln1_b'], blk['wqkv'], H, tq, vmem_limit)

    def kv_idx(i, j, kvf, kvl):
        jj = jnp.maximum(jnp.minimum(j, kvl[i]), kvf[i])   # clamp -> no DMA when skipped
        return (0, jj, 0)

    def segk_idx(i, j, kvf, kvl):
        jj = jnp.maximum(jnp.minimum(j, kvl[i]), kvf[i])
        return (0, jj)

    grid_spec = pltpu.PrefetchScalarGridSpec(
        num_scalar_prefetch=2,
        grid=(nq, nkv),
        in_specs=[
            pl.BlockSpec((tq, C), lambda i, j, *_: (i, 0)),            # x (residual)
            pl.BlockSpec((tq, 1), lambda i, j, *_: (i, 0)),            # seg ids (q rows)
            pl.BlockSpec((1, tk), segk_idx),                           # seg ids (kv rows)
            pl.BlockSpec((H, tq, dh), lambda i, j, *_: (0, i, 0)),     # q
            pl.BlockSpec((H, tk, dh), kv_idx),                         # k
            pl.BlockSpec((H, tk, dh), kv_idx),                         # v
            _resident_spec((C, C)),                                    # wout
            _resident_spec((1, C)),                                    # bout
            _resident_spec((1, C)),                                    # ln2 gamma
            _resident_spec((1, C)),                                    # ln2 beta
            _resident_spec((C, M)),                                    # w1
            _resident_spec((1, M)),                                    # b1
            _resident_spec((M, C)),                                    # w2
            _resident_spec((1, C)),                                    # b2
        ],
        out_specs=pl.BlockSpec((tq, C), lambda i, j, *_: (i, 0)),
        scratch_shapes=[
            pltpu.VMEM((H, tq, 1), jnp.float32),      # running max
            pltpu.VMEM((H, tq, 1), jnp.float32),      # running denom
            pltpu.VMEM((H, tq, dh), jnp.float32),     # running accumulator
        ],
    )
    return pl.pallas_call(
        _attn_mlp_kernel,
        out_shape=jax.ShapeDtypeStruct((L, C), jnp.bfloat16),
        grid_spec=grid_spec,
        compiler_params=pltpu.CompilerParams(
            dimension_semantics=("parallel", "arbitrary"),
            vmem_limit_bytes=vmem_limit),
    )(kv_first, kv_last, x, seg_col, seg_row, q, k, v,
      blk['wout'], blk['bout'], blk['ln2_g'], blk['ln2_b'],
      blk['w1'], blk['b1'], blk['w2'], blk['b2'])


def _final_ln_kernel(x_ref, g_ref, b_ref, out_ref):
    out_ref[...] = _layernorm(x_ref[...].astype(jnp.float32), g_ref[...], b_ref[...])


def final_layernorm(x, g, b, tq, vmem_limit):
    L, C = x.shape
    tq = _row_tile(L, tq)
    return pl.pallas_call(
        _final_ln_kernel,
        out_shape=jax.ShapeDtypeStruct((L, C), jnp.float32),
        grid=(L // tq,),
        in_specs=[pl.BlockSpec((tq, C), lambda i: (i, 0)),
                  _resident_spec((1, C)),
                  _resident_spec((1, C))],
        out_specs=pl.BlockSpec((tq, C), lambda i: (i, 0)),
        compiler_params=pltpu.CompilerParams(
            dimension_semantics=("parallel",),
            vmem_limit_bytes=vmem_limit),
    )(x, g, b)


# ----------------------------------------------------------------------------
# Glue (plain JAX / numpy): patch extraction, pos-embed resample, segment ids
# ----------------------------------------------------------------------------
def extract_patches(image, patch_size):
    # (C_in, D, H, W) -> (L, C_in*p0*p1*p2); token order (d, h, w) row-major,
    # patch flattening (C_in, p0, p1, p2) matching Conv3d weight layout.
    C, D, H, W = image.shape
    p0, p1, p2 = patch_size
    d, h, w = D // p0, H // p1, W // p2
    x = image.reshape(C, d, p0, h, p1, w, p2)
    x = x.transpose(1, 3, 5, 0, 2, 4, 6)
    return x.reshape(d * h * w, C * p0 * p1 * p2), (d, h, w)


def resample_pos_embed(pos, shape):
    # TODO(synk): spadop.resample approximated with trilinear jax.image.resize.
    if tuple(pos.shape[2:]) == tuple(shape):
        return pos
    return jax.image.resize(pos, (1, pos.shape[1]) + tuple(shape), method='trilinear')


def _segment_ids(lengths):
    return jnp.concatenate(
        [jnp.full((n,), i, jnp.int32) for i, n in enumerate(lengths)])


def _kv_tile_ranges(lengths, tq, tk):
    """Per q-tile range [first, last] of kv tiles overlapping its image segments."""
    L = int(sum(lengths))
    seg = np.repeat(np.arange(len(lengths)), lengths)
    nq, nk = L // tq, L // tk
    qlo = seg.reshape(nq, tq).min(1)
    qhi = seg.reshape(nq, tq).max(1)
    klo = seg.reshape(nk, tk).min(1)
    khi = seg.reshape(nk, tk).max(1)
    kv_first = np.zeros((nq,), np.int32)
    kv_last = np.zeros((nq,), np.int32)
    for i in range(nq):
        ov = np.nonzero((klo <= qhi[i]) & (khi >= qlo[i]))[0]
        kv_first[i] = ov.min()
        kv_last[i] = ov.max()
    return jnp.asarray(kv_first), jnp.asarray(kv_last)


# ----------------------------------------------------------------------------
# Parameter init (deterministic, synthetic)
# ----------------------------------------------------------------------------
def init_params(key, in_channels, patch_size, pos_embed_shape,
                hidden, mlp_dim, num_layers, num_heads):
    del num_heads
    keys = jax.random.split(key, 3 + num_layers)
    p0, p1, p2 = patch_size
    bf16 = jnp.bfloat16

    def rnd(k, shape, dtype=jnp.float32, scale=0.02):
        return (scale * jax.random.normal(k, shape)).astype(dtype)

    params = {
        # Conv3d(in_channels, hidden, kernel=stride=patch_size); f32 master copy
        'proj_w': rnd(keys[0], (hidden, in_channels, p0, p1, p2)),
        'proj_b': rnd(keys[1], (hidden,)),
        'pos_embed': rnd(keys[2], (1, hidden) + tuple(pos_embed_shape)),
        'norm_g': jnp.ones((1, hidden), jnp.float32),
        'norm_b': jnp.zeros((1, hidden), jnp.float32),
        'blocks': [],
    }
    for i in range(num_layers):
        bk = jax.random.split(keys[3 + i], 6)
        params['blocks'].append({
            'ln1_g': jnp.ones((1, hidden), jnp.float32),
            'ln1_b': jnp.zeros((1, hidden), jnp.float32),
            # NOTE: weights stored input-major (in, out); a PyTorch nn.Linear weight
            # (out, in) must be transposed when porting checkpoints.
            'wqkv': rnd(bk[0], (hidden, 3 * hidden), bf16),   # qkv_bias=False
            'wout': rnd(bk[1], (hidden, hidden), bf16),
            'bout': rnd(bk[2], (1, hidden)),
            'ln2_g': jnp.ones((1, hidden), jnp.float32),
            'ln2_b': jnp.zeros((1, hidden), jnp.float32),
            'w1': rnd(bk[3], (hidden, mlp_dim), bf16),
            'b1': rnd(bk[4], (1, mlp_dim)),
            'w2': rnd(bk[5], (mlp_dim, hidden), bf16),
            'b2': jnp.zeros((1, hidden), jnp.float32),
        })
    return params


# ----------------------------------------------------------------------------
# Full forward (mirrors ImageEncoderViT.forward)
# ----------------------------------------------------------------------------
def image_encoder_vit_forward(params, image_list, patch_size_list, num_heads):
    tq_pref, tk_pref, vmem_limit = _chip_defaults()
    hidden = params['proj_w'].shape[0]
    w_flat = params['proj_w'].reshape(hidden, -1).T.astype(jnp.bfloat16)   # (K, C)
    b = params['proj_b'].reshape(1, hidden)

    # --- PatchEmbeddingBlock ---
    # TODO(synk): the adaptive Downsample path (forward patch_size != conv kernel_size,
    # which resamples conv weights) is not modeled; we assume they match.
    x_list, shape_list = [], []
    for image, ps in zip(image_list, patch_size_list):
        patches, shape = extract_patches(image.astype(jnp.float32), ps)
        pos = resample_pos_embed(params['pos_embed'], shape)      # (1, C, d, h, w)
        pos_flat = pos.reshape(hidden, -1).T                      # (L_i, C)
        x_list.append(patch_embed(patches, w_flat, b, pos_flat, tq_pref, vmem_limit))
        shape_list.append(shape)
    lengths = [xi.shape[0] for xi in x_list]
    x = jnp.concatenate(x_list, axis=0)                           # (L_total, C) bf16
    L = x.shape[0]

    # BlockDiagonalMask -> int32 segment ids + per-tile overlap ranges (scalar prefetch)
    tq = _row_tile(L, tq_pref)
    tk = _lane_tile(L, tk_pref)
    seg = _segment_ids(lengths)
    seg_col = seg[:, None]
    seg_row = seg[None, :]
    kv_first, kv_last = _kv_tile_ranges(lengths, tq, tk)
    # dropout_rate = 0.0 -> dropout is identity

    # --- transformer blocks ---
    for blk in params['blocks']:
        x = transformer_block(x, seg_col, seg_row, kv_first, kv_last, blk,
                              num_heads, tq, tk, vmem_limit)

    # --- final LayerNorm ---
    x = final_layernorm(x, params['norm_g'], params['norm_b'], tq, vmem_limit)

    # --- split back per image and rearrange '1 (d h w) c -> 1 c d h w' ---
    outs, off = [], 0
    for (d, h, w), n in zip(shape_list, lengths):
        xi = x[off:off + n]
        off += n
        outs.append(xi.reshape(d, h, w, hidden).transpose(3, 0, 1, 2)[None])
    return outs


# ----------------------------------------------------------------------------
if __name__ == "__main__":
    key = jax.random.PRNGKey(0)

    in_channels = 4
    patch_size = (2, 2, 2)
    pos_embed_shape = (4, 4, 4)
    hidden, mlp_dim = 128, 256
    num_layers, num_heads = 2, 4

    k_params, k_img1, k_img2, k_img3 = jax.random.split(key, 4)
    params = init_params(k_params, in_channels, patch_size, pos_embed_shape,
                         hidden, mlp_dim, num_layers, num_heads)

    # Variable spatial sizes; image boundaries (tokens 320 and 512) exercise mixed
    # (boundary) tiles, fully-masked rows, AND fully-skipped (q_tile, kv_tile) pairs.
    image1 = jax.random.normal(k_img1, (in_channels, 8, 8, 40), jnp.float32)  # (4,4,20) -> 320 tokens
    image2 = jax.random.normal(k_img2, (in_channels, 8, 8, 24), jnp.float32)  # (4,4,12) -> 192 tokens
    image3 = jax.random.normal(k_img3, (in_channels, 8, 8, 32), jnp.float32)  # (4,4,16) -> 256 tokens

    outs = image_encoder_vit_forward(
        params, [image1, image2, image3], [patch_size] * 3, num_heads)
    outs = jax.block_until_ready(outs)

    assert outs[0].shape == (1, hidden, 4, 4, 20), outs[0].shape
    assert outs[1].shape == (1, hidden, 4, 4, 12), outs[1].shape
    assert outs[2].shape == (1, hidden, 4, 4, 16), outs[2].shape
    assert all(bool(jnp.all(jnp.isfinite(o))) for o in outs)
    print("KERNEL_OK")
</pallas_src>

<mosaic_0001>
module attributes {stable_mosaic.version = 11 : i64} {
  func.func @_patch_embed_kernel(%arg0: i32, %arg1: memref<160x32xf32, #tpu.memory_space<vmem>>, %arg2: memref<32x128xbf16, #tpu.memory_space<vmem>>, %arg3: memref<1x128xf32, #tpu.memory_space<vmem>>, %arg4: memref<160x128xf32, #tpu.memory_space<vmem>>, %arg5: memref<160x128xbf16, #tpu.memory_space<vmem>>) attributes {dimension_semantics = [#tpu.dimension_semantics<parallel>], iteration_bounds = array<i64: 2>, scalar_prefetch = 0 : i64, scratch_operands = 0 : i64, tpu.core_type = #tpu.core_type<tc>, window_params = [{transform_indices = @transform_0, window_bounds = array<i64: 160, 32>}, {pipeline_mode = #tpu.pipeline_mode<synchronous>, transform_indices = @transform_1, window_bounds = array<i64: 32, 128>}, {pipeline_mode = #tpu.pipeline_mode<synchronous>, transform_indices = @transform_2, window_bounds = array<i64: 1, 128>}, {transform_indices = @transform_3, window_bounds = array<i64: 160, 128>}, {transform_indices = @transform_4, window_bounds = array<i64: 160, 128>}]} {
    %c0 = arith.constant 0 : index
    %c0_0 = arith.constant 0 : index
    %0 = vector.load %arg1[%c0, %c0_0] : memref<160x32xf32, #tpu.memory_space<vmem>>, vector<160x32xf32>
    %1 = arith.truncf %0 : vector<160x32xf32> to vector<160x32xbf16>
    %c0_1 = arith.constant 0 : index
    %c0_2 = arith.constant 0 : index
    %2 = vector.load %arg2[%c0_1, %c0_2] : memref<32x128xbf16, #tpu.memory_space<vmem>>, vector<32x128xbf16>
    %cst = arith.constant dense<0.000000e+00> : vector<160x128xf32>
    %3 = tpu.matmul %1, %2, %cst {dimension_numbers = #tpu.dot_dimension_numbers<[1], [0], [0], [1], [0, 0, 1, 1], [], []>} : vector<160x32xbf16>, vector<32x128xbf16>, vector<160x128xf32> -> vector<160x128xf32>
    %c0_3 = arith.constant 0 : index
    %c0_4 = arith.constant 0 : index
    %4 = vector.load %arg3[%c0_3, %c0_4] : memref<1x128xf32, #tpu.memory_space<vmem>>, vector<1x128xf32>
    %5 = vector.broadcast %4 : vector<1x128xf32> to vector<160x128xf32>
    %6 = arith.addf %3, %5 : vector<160x128xf32>
    %c0_5 = arith.constant 0 : index
    %c0_6 = arith.constant 0 : index
    %7 = vector.load %arg4[%c0_5, %c0_6] : memref<160x128xf32, #tpu.memory_space<vmem>>, vector<160x128xf32>
    %8 = arith.addf %6, %7 : vector<160x128xf32>
    %9 = arith.truncf %8 : vector<160x128xf32> to vector<160x128xbf16>
    %c0_7 = arith.constant 0 : index
    %c0_8 = arith.constant 0 : index
    %10 = vector.load %arg5[%c0_7, %c0_8] : memref<160x128xbf16, #tpu.memory_space<vmem>>, vector<160x128xbf16>
    tpu.vector_store %arg5[%c0_7, %c0_8], %9 {strides = array<i32>} : memref<160x128xbf16, #tpu.memory_space<vmem>>, vector<160x128xbf16>,
    return
  }
  func.func @transform_0(%arg0: i32) -> (i32, i32) {
    %c0_i32 = arith.constant 0 : i32
    %c0_i32_0 = arith.constant 0 : i32
    return %arg0, %c0_i32 : i32, i32
  }
  func.func @transform_1(%arg0: i32) -> (i32, i32) {
    %c0_i32 = arith.constant 0 : i32
    %c0_i32_0 = arith.constant 0 : i32
    %c0_i32_1 = arith.constant 0 : i32
    return %c0_i32, %c0_i32_0 : i32, i32
  }
  func.func @transform_2(%arg0: i32) -> (i32, i32) {
    %c0_i32 = arith.constant 0 : i32
    %c0_i32_0 = arith.constant 0 : i32
    %c0_i32_1 = arith.constant 0 : i32
    return %c0_i32, %c0_i32_0 : i32, i32
  }
  func.func @transform_3(%arg0: i32) -> (i32, i32) {
    %c0_i32 = arith.constant 0 : i32
    %c0_i32_0 = arith.constant 0 : i32
    return %arg0, %c0_i32 : i32, i32
  }
  func.func @transform_4(%arg0: i32) -> (i32, i32) {
    %c0_i32 = arith.constant 0 : i32
    %c0_i32_0 = arith.constant 0 : i32
    return %arg0, %c0_i32 : i32, i32
  }
}

</mosaic_0001>

<bundles_post_ra>
// kernel: tpu_custom_call.1
= control target key start
LH: loop header
LB: loop body
LE: loop exit
PB: predicated region body
PF: predicated region fallthrough
CT: control target
= control target key end

     0   :  { %9 = vsyncpa [#allocation3], 0  ;;  %s1162_s0 = inlined_call_operand.vmem [shape: f32[320,32], index: 0, kind: input, shape index: {}]   ;;  %s1163_s1 = inlined_call_operand.vmem [shape: bf16[32,128], index: 1, kind: input, shape index: {}]   ;;  %s1164_s2 = inlined_call_operand.vmem [shape: f32[1,128], index: 2, kind: input, shape index: {}]   ;;  %s1165_s3 = inlined_call_operand.vmem [shape: f32[320,128], index: 3, kind: input, shape index: {}]   ;;  %s1166_s4 = inlined_call_operand.hbm [shape: bf16[320,128], index: 4, kind: output, shape index: {}]  }
   0x1   :  { %11 = vsyncpa [#allocation3 + $0x1], 0  ;;  %s945_s15 = smov 0   ;;  %s947_s16 = smov 0  }
   0x2   :  { %s949_s17 = smov 0   ;;  %s951_s18 = smov 0  }
   0x3 LB: > { %s966_s19 = sadd.s32 4294967295, %s915_s18   ;;  %s647_s20 = sadd.s32 4294967294, %s915_s18   ;;  %s915_s18 = sphi %s951_s18, %s1172_s18   ;;  %s911_s17 = sphi %s949_s17, %s1171_s17   ;;  %s907_s16 = sphi %s947_s16, %s1170_s16   ;;  %s903_s15 = sphi %s945_s15, %s1169_s15  }
   0x4   : > { %s970_s21 = sadd.s32 1, %s915_s18   ;;  %s118_s22 = sadd.s32 1, %s911_s17 }
   0x5   : > { %s115_s23 = ssub.s32 %s915_s18, %s970_s21  ;;  %p128_p0 = scmp.ne.s32.totalorder %s911_s17, %s907_s16 }
   0x6   : > { %p116_p1 = scmp.eq.s32.totalorder %s115_s23, 0  ;;  %p129_p2 = scmp.eq.s32.totalorder %s966_s19, 1 }
   0x7   : > { %p134_p3 = scmp.ne.s32.totalorder %s907_s16, %s903_s15  ;;  %p135_p4 = scmp.eq.s32.totalorder %s647_s20, 1 }
   0x8   : > { %s981_s24 = scalar_select %p116_p1, %s911_s17, %s118_s22  }
   0x9   : > { %p983_p5 = por %p129_p2, %p128_p0  ;;  %p987_p6 = por %p135_p4, %p134_p3 }
   0xa   : > { %p650_p7 = scmp.ge.s32.totalorder %s915_s18, 1  ;;  %p177_p8 = scmp.lt.s32.totalorder %s915_s18, 3 }
   0xc   : > { %p178_p9 = pnand %p650_p7, %p177_p8 }
   0xd   : > { %v851_v0 = vld [vmem:[%s1163_s1] sm:$0xff] (!%p178_p9)   ;;  %s208_s29 = smul.u32 (!%p178_p9), 20, %s966_s19  ;;  %v852_v1 = vld [vmem:[%s1163_s1 + $0x8] sm:$0xff] (!%p178_p9)   ;;  %vm275_vm0 = vcmask (!%p178_p9), 261120   ;;  %s205_s20 = sand.u32 (!%p178_p9), 1, %s907_s16  }
   0xe   : > { %181 = sbr.rel (%p178_p9) target bundleno = 280 (0x118), region = 36  ;;  %781 = vmatprep.subr.bf16.mxu0 (!%p178_p9), %v851_v0  ;;  %805 = vmatprep.subr.bf16.mxu1 (!%p178_p9), %v851_v0  ;;  %v1050_v32 = vld [vmem:[%s1164_s2] ss:$0 sm:$0xff] (!%p178_p9)  ;;  %s917_s7 = smov (!%p178_p9), [#allocation2]  }
   0xf   : > { %p209_p10 = scmp.lt.s32.totalorder (!%p178_p9), %s208_s29, 39  ;;  %782 = vmatpush3.bf16.msra.mxu0 (!%p178_p9), %v851_v0  ;;  %807 = vmatpush3.bf16.msra.mxu1 (!%p178_p9), %v851_v0  ;;  %s1060_s22 = smul.u32 (!%p178_p9), 80, %s205_s20 }
  0x10   : > { %783 = vmatprep.subr.bf16.mxu0 (!%p178_p9), %v852_v1  ;;  %806 = vmatprep.subr.bf16.mxu1 (!%p178_p9), %v852_v1  ;;  %s709_s27 = smul.u32 (!%p178_p9), 1280, %s966_s19  ;;  %s1121_s19 = scalar_lea.sflag (!%p178_p9), [#allocation3], %s205_s20 }
  0x11   : > { %s1075_s23 = scalar_lea.vmem (!%p178_p9), [#allocation2], %s1060_s22  ;;  %s857_s8 = sshll.u32 (!%p178_p9), %s917_s7, 4  ;;  %s858_s8 = int_to_ptr.vmem [resolvable:$false] %s857_s8 }
  0x12   : > { %s573_s28 = sshll.u32 (!%p178_p9), %s1075_s23, 4  ;;  %s1113_s5 = scalar_lea.hbm (!%p178_p9), %s1166_s4, %s709_s27  ;;  %s1115_s28 = int_to_ptr.vmem [resolvable:$true] %s573_s28 }
  0x13   : > { %784 = vmatpush3.bf16.msra.mxu0 (!%p178_p9), %v852_v1  ;;  %808 = vmatpush3.bf16.msra.mxu1 (!%p178_p9), %v852_v1  ;;  %p860_p0 = scmp.lt.s32.totalorder (!%p178_p9), %s1115_s28, %s858_s8 }
  0x15   : > { %s1174_s29 = smov (!%p209_p10, %s208_s29), 39 }
  0x16   : > { %s651_s6 = sshll.u32 %s1174_s29, 3 }
  0x17   : > { %s1008_s9 = scalar_lea.vmem %s1162_s0, %s651_s6  ;;  %s1045_s12 = scalar_lea.vmem %s1165_s3, %s651_s6 }
  0x18   : > { %v222_v2 = vld [vmem:[%s1008_s9] sm:$0xff]  ;;  %v223_v3 = vld [vmem:[%s1008_s9 + $0x8] sm:$0xff]  ;;  %v224_v4 = vld [vmem:[%s1008_s9 + $0x10] sm:$0xff]  ;;  %s853_s6 = scalar_lea.vmem %s1115_s28, 1280 }
  0x19   : > { %v242_v5 = vpack.c.bf16 %v223_v3, %v222_v2  ;;  %v225_v6 = vld [vmem:[%s1008_s9 + $0x18] sm:$0xff]  ;;  %v234_v7 = vld [vmem:[%s1008_s9 + $0x60] sm:$0xff]  ;;  %v235_v8 = vld [vmem:[%s1008_s9 + $0x68] sm:$0xff]  ;;  %p854_p11 = scmp.ne.s32.totalorder %s1115_s28, %s853_s6 }
  0x1a   : > { %v243_v9 = vpack.c.bf16 %v225_v6, %v224_v4  ;;  %v248_v10 = vpack.c.bf16 %v235_v8, %v234_v7  ;;  %v236_v11 = vld [vmem:[%s1008_s9 + $0x70] sm:$0xff]  ;;  %v237_v12 = vld [vmem:[%s1008_s9 + $0x78] sm:$0xff]  ;;  %v226_v13 = vld [vmem:[%s1008_s9 + $0x20] sm:$0xff] }
  0x1b   : > { %785 = vmatprep.mubr.msk.bf16.mxu0 %vm275_vm0, %v242_v5  ;;  %v249_v14 = vpack.c.bf16 %v237_v12, %v236_v11  ;;  %v227_v15 = vld [vmem:[%s1008_s9 + $0x28] sm:$0xff]  ;;  %v238_v17 = vld [vmem:[%s1008_s9 + $0x80] sm:$0xff]  ;;  %v228_v19 = vld [vmem:[%s1008_s9 + $0x30] sm:$0xff]  ;;  %p855_p12 = pnand %p854_p11, %p983_p5 }
  0x1c   : > { %786 = vmatmul.mubr.msk.bf16.vlgmr.msra.gmra.mrb[0].mxu0 %vm275_vm0, %v243_v9  ;;  %797 = vmatprep.mubr.msk.bf16.mxu1 %vm275_vm0, %v248_v10  ;;  %v244_v16 = vpack.c.bf16 %v227_v15, %v226_v13  ;;  %v239_v18 = vld [vmem:[%s1008_s9 + $0x88] sm:$0xff]  ;;  %v229_v20 = vld [vmem:[%s1008_s9 + $0x38] sm:$0xff]  ;;  %v240_v22 = vld [vmem:[%s1008_s9 + $0x90] sm:$0xff] }
  0x1d   : > { %798 = vmatmul.mubr.msk.bf16.vlgmr.msra.gmra.mrb[0].mxu1 %vm275_vm0, %v249_v14  ;;  %v250_v21 = vpack.c.bf16 %v239_v18, %v238_v17  ;;  %v241_v23 = vld [vmem:[%s1008_s9 + $0x98] sm:$0xff]  ;;  %v230_v24 = vld [vmem:[%s1008_s9 + $0x40] sm:$0xff]  ;;  %v231_v25 = vld [vmem:[%s1008_s9 + $0x48] sm:$0xff]  ;;  %v245_v26 = vpack.c.bf16 %v229_v20, %v228_v19  ;;  %p856_p13 = pneg %p855_p12 }
  0x1e   : > { %789 = vmatprep.mubr.msk.bf16.mxu0 %vm275_vm0, %v244_v16  ;;  %v251_v27 = vpack.c.bf16 %v241_v23, %v240_v22  ;;  %v246_v28 = vpack.c.bf16 %v231_v25, %v230_v24  ;;  %v232_v29 = vld [vmem:[%s1008_s9 + $0x50] sm:$0xff]  ;;  %v233_v30 = vld [vmem:[%s1008_s9 + $0x58] sm:$0xff]  ;;  %v419_v37 = vld [vmem:[%s1045_s12] sm:$0xff]  ;;  %s859_s9 = scalar_lea.vmem %s858_s8, 2560 }
  0x1f   : > { %801 = vmatprep.mubr.msk.bf16.mxu1 %vm275_vm0, %v250_v21  ;;  %v247_v31 = vpack.c.bf16 %v233_v30, %v232_v29  ;;  %v421_v34 = vld [vmem:[%s1045_s12 + $0x10] sm:$0xff]  ;;  %v422_v42 = vld [vmem:[%s1045_s12 + $0x18] sm:$0xff]  ;;  %v431_v45 = vld [vmem:[%s1045_s12 + $0x60] sm:$0xff]  ;;  %p861_p1 = scmp.lt.s32.totalorder %s859_s9, %s853_s6 }
  0x20   : > { %v433_v39 = vld [vmem:[%s1045_s12 + $0x70] sm:$0xff]  ;;  %v420_v49 = vld [vmem:[%s1045_s12 + $0x8] sm:$0xff]  ;;  %v434_v52 = vld [vmem:[%s1045_s12 + $0x78] sm:$0xff] }
  0x21   : > { %v432_v58 = vld [vmem:[%s1045_s12 + $0x68] sm:$0xff]  ;;  %v425_v5 = vld [vmem:[%s1045_s12 + $0x30] sm:$0xff]  ;;  %v423_v9 = vld [vmem:[%s1045_s12 + $0x20] sm:$0xff]  ;;  %p862_p2 = por %p861_p1, %p860_p0 }
  0x22   : > { %v437_v11 = vld [vmem:[%s1045_s12 + $0x90] sm:$0xff]  ;;  %v426_v14 = vld [vmem:[%s1045_s12 + $0x38] sm:$0xff]  ;;  %v435_v17 = vld [vmem:[%s1045_s12 + $0x80] sm:$0xff] }
  0x23   : > { %v424_v21 = vld [vmem:[%s1045_s12 + $0x28] sm:$0xff]  ;;  %v438_v24 = vld [vmem:[%s1045_s12 + $0x98] sm:$0xff]  ;;  %p863_p3 = pnand %p862_p2, %p856_p13 }
  0x24   : > { %790 = vmatmul.mubr.msk.bf16.gmra.mrb[4].mxu0 %vm275_vm0, %v245_v26  ;;  %v436_v30 = vld [vmem:[%s1045_s12 + $0x88] sm:$0xff] }
  0x25   : > { %802 = vmatmul.mubr.msk.bf16.gmra.mrb[4].mxu1 %vm275_vm0, %v251_v27  ;;  %793 = vmatprep.mubr.msk.bf16.mxu0 %vm275_vm0, %v246_v28 }
  0x2c   : > { %794 = vmatmul.mubr.msk.bf16.gmra.mrb[8].mxu0 %vm275_vm0, %v247_v31 }
  0xef   : > { %v787_v33 = vpop.f32.mrb[0].mxu0 }
  0xf0   : > { %v349_v35 = vadd.f32 %v787_v33, %v1050_v32  ;;  %v340_v36 = vpop.f32.mrb[1].mxu0  ;;  %v799_v38 = vpop.f32.mrb[0].mxu1 }
  0xf1   : > { %v341_v40 = vadd.f32 %v1050_v32, %v340_v36  ;;  %v788_v41 = vpop.f32.mrb[2].mxu0  ;;  %v397_v43 = vadd.f32 %v799_v38, %v1050_v32  ;;  %v388_v44 = vpop.f32.mrb[1].mxu1 }
  0xf2   : > { %v441_v46 = vadd.f32 %v421_v34, %v349_v35  ;;  %v352_v47 = vadd.f32 %v788_v41, %v1050_v32  ;;  %v343_v48 = vpop.f32.mrb[3].mxu0  ;;  %v389_v50 = vadd.f32 %v1050_v32, %v388_v44  ;;  %v800_v51 = vpop.f32.mrb[2].mxu1 }
  0xf3   : > { %v439_v53 = vadd.f32 %v419_v37, %v341_v40  ;;  %v344_v54 = vadd.f32 %v1050_v32, %v343_v48  ;;  %v453_v55 = vadd.f32 %v433_v39, %v397_v43  ;;  %v400_v56 = vadd.f32 %v800_v51, %v1050_v32  ;;  %v391_v57 = vpop.f32.mrb[3].mxu1 }
  0xf4   : > { %v442_v59 = vadd.f32 %v422_v42, %v352_v47  ;;  %v451_v60 = vadd.f32 %v431_v45, %v389_v50  ;;  %v392_v61 = vadd.f32 %v1050_v32, %v391_v57  ;;  %v429_v42 = vld [vmem:[%s1045_s12 + $0x50] sm:$0xff] }
  0xf5   : > { %v440_v62 = vadd.f32 %v420_v49, %v344_v54  ;;  %v454_v63 = vadd.f32 %v434_v52, %v400_v56  ;;  %v430_v49 = vld [vmem:[%s1045_s12 + $0x58] sm:$0xff] }
  0xf6   : > { %v718_v0 = vpack.c.bf16 %v442_v59, %v441_v46  ;;  %v452_v1 = vadd.f32 %v432_v58, %v392_v61  ;;  %v427_v46 = vld [vmem:[%s1045_s12 + $0x40] sm:$0xff] }
  0xf7   : > { %v713_v2 = vpack.c.bf16 %v440_v62, %v439_v53  ;;  %v748_v3 = vpack.c.bf16 %v454_v63, %v453_v55  ;;  %v791_v4 = vpop.f32.mrb[4].mxu0  ;;  %v428_v53 = vld [vmem:[%s1045_s12 + $0x48] sm:$0xff] }
  0xf8   : > { %760 = vst [vmem:[%s1075_s23 + $0x8] sm:$0xff] %v718_v0   ;;  %v365_v6 = vadd.f32 %v791_v4, %v1050_v32  ;;  %v743_v7 = vpack.c.bf16 %v452_v1, %v451_v60  ;;  %v356_v8 = vpop.f32.mrb[5].mxu0  ;;  %v803_v10 = vpop.f32.mrb[4].mxu1 }
  0xf9   : > { %714 = vst [vmem:[%s1075_s23] sm:$0xff] %v713_v2   ;;  %766 = vst [vmem:[%s1075_s23 + $0x38] sm:$0xff] %v748_v3   ;;  %v357_v12 = vadd.f32 %v1050_v32, %v356_v8  ;;  %v792_v13 = vpop.f32.mrb[6].mxu0  ;;  %v413_v15 = vadd.f32 %v803_v10, %v1050_v32  ;;  %v404_v16 = vpop.f32.mrb[5].mxu1 }
  0xfa   : > { %v445_v18 = vadd.f32 %v425_v5, %v365_v6  ;;  %765 = vst [vmem:[%s1075_s23 + $0x30] sm:$0xff] %v743_v7   ;;  %v368_v19 = vadd.f32 %v792_v13, %v1050_v32  ;;  %v359_v20 = vpop.f32.mrb[7].mxu0  ;;  %v405_v22 = vadd.f32 %v1050_v32, %v404_v16  ;;  %v804_v23 = vpop.f32.mrb[6].mxu1 }
  0xfb   : > { %v443_v25 = vadd.f32 %v423_v9, %v357_v12  ;;  %v360_v26 = vadd.f32 %v1050_v32, %v359_v20  ;;  %v457_v27 = vadd.f32 %v437_v11, %v413_v15  ;;  %v416_v28 = vadd.f32 %v804_v23, %v1050_v32  ;;  %v407_v29 = vpop.f32.mrb[7].mxu1 }
  0xfc   : > { %v446_v31 = vadd.f32 %v426_v14, %v368_v19  ;;  %v455_v33 = vadd.f32 %v435_v17, %v405_v22  ;;  %v408_v34 = vadd.f32 %v1050_v32, %v407_v29 }
  0xfd   : > { %v444_v35 = vadd.f32 %v424_v21, %v360_v26  ;;  %v458_v36 = vadd.f32 %v438_v24, %v416_v28 }
  0xfe   : > { %v728_v37 = vpack.c.bf16 %v446_v31, %v445_v18  ;;  %v456_v38 = vadd.f32 %v436_v30, %v408_v34 }
  0xff   : > { %v723_v39 = vpack.c.bf16 %v444_v35, %v443_v25  ;;  %v758_v40 = vpack.c.bf16 %v458_v36, %v457_v27  ;;  %v795_v41 = vpop.f32.mrb[8].mxu0 }
 0x100   : > { %762 = vst [vmem:[%s1075_s23 + $0x18] sm:$0xff] %v728_v37   ;;  %v381_v43 = vadd.f32 %v795_v41, %v1050_v32  ;;  %v753_v44 = vpack.c.bf16 %v456_v38, %v455_v33  ;;  %v372_v45 = vpop.f32.mrb[9].mxu0 }
 0x101   : > { %761 = vst [vmem:[%s1075_s23 + $0x10] sm:$0xff] %v723_v39   ;;  %768 = vst [vmem:[%s1075_s23 + $0x48] sm:$0xff] %v758_v40   ;;  %v373_v47 = vadd.f32 %v1050_v32, %v372_v45  ;;  %v796_v48 = vpop.f32.mrb[10].mxu0 }
 0x102   : > { %v449_v50 = vadd.f32 %v429_v42, %v381_v43  ;;  %767 = vst [vmem:[%s1075_s23 + $0x40] sm:$0xff] %v753_v44   ;;  %v384_v51 = vadd.f32 %v796_v48, %v1050_v32  ;;  %v375_v52 = vpop.f32.mrb[11].mxu0 }
 0x103   : > { %v447_v54 = vadd.f32 %v427_v46, %v373_v47  ;;  %v376_v55 = vadd.f32 %v1050_v32, %v375_v52 }
 0x104   : > { %v450_v56 = vadd.f32 %v430_v49, %v384_v51 }
 0x105   : > { %v448_v57 = vadd.f32 %v428_v53, %v376_v55 }
 0x106   : > { %v738_v58 = vpack.c.bf16 %v450_v56, %v449_v50 }
 0x107   : > { %v733_v59 = vpack.c.bf16 %v448_v57, %v447_v54 }
 0x108   : > { %764 = vst [vmem:[%s1075_s23 + $0x28] sm:$0xff] %v738_v58  }
 0x109   : > { %763 = vst [vmem:[%s1075_s23 + $0x20] sm:$0xff] %v733_v59  }
 0x10a   : > { %866 = shalt.err (!%p863_p3)
}
 0x10b   : > { %s867_s10 = scalar_lea.hbm %s1113_s5, 1280  ;;  %s871_s13 = scalar_lea.hbm %s1166_s4, 2560 }
 0x10c   : > { %p868_p4 = scmp.ne.s32.totalorder %s1113_s5, %s867_s10  ;;  %p872_p9 = scmp.lt.u32.totalorder %s1113_s5, %s1166_s4 }
 0x10d   : > { %p873_p10 = scmp.lt.u32.totalorder %s871_s13, %s867_s10  ;;  %p875_p12 = scmp.lt.u32.totalorder %s867_s10, %s1113_s5 }
 0x10e   : > { %p869_p7 = pnand %p868_p4, %p983_p5 }
 0x10f   : > { %p874_p11 = por %p873_p10, %p872_p9 }
 0x110   : > { %p870_p8 = pneg %p869_p7 }
 0x111   : > { %p876_p13 = por %p875_p12, %p874_p11 }
 0x113   : > { %p877_p0 = pnand %p876_p13, %p870_p8 }
 0x115   : > { %880 = shalt.err (!%p877_p0)
}
 0x116   : > { %s918_s22 = smov 64   ;;  %s919_s23 = smov 4  }
 0x117   : > { %810 = dma.vmem_to_hbm [thread:$0]  (%p983_p5), %s1115_s28, 1280, %s1113_s5, %s1121_s19, %s918_s22, %s918_s22, %s919_s23  }
 0x118 PF: > { %p816_p1 = scmp.ge.s32.totalorder %s915_s18, 2  ;;  %s588_s27 = sand.u32 1, %s903_s15  }
 0x119   : > { %s589_s29 = scalar_lea.sflag [#allocation3], %s588_s27 }
 0x11a   : > { %p813_p2 = pnand %p816_p1, %p987_p6 }
 0x11c   : > { %898 = dma.done.wait (!%p813_p2), %s589_s29, 1280  }
 0x11d   : > { %900 = vsyncadd (!%p813_p2), %s589_s29, 4294966016  ;;  %p14_p3 = scmp.ge.s32.totalorder %s970_s21, 4   ;;  %s1169_s15 = smov %s907_s16 }
 0x11e   : > { %s1170_s16 = smov %s911_s17  ;;  %s1171_s17 = smov %s981_s24 }
 0x11f   : > { %s1172_s18 = smov %s970_s21  ;;  %16 = sbr.rel (!%p14_p3) target bundleno = 3 (0x3), region = 74 }
 0x126   :  { %594 = vsyncpa [#allocation3], 1 }
 0x127   :  { %596 = vsyncpa [#allocation3 + $0x1], 1 }

</bundles_post_ra>
